<compile_context>
chip_gen: v7x
topology: tpu7x:2x2x1
jax: 0.10.0
libtpu: 0.0.40
codegen_flags: <defaults>
</compile_context>

<pallas_src>
import jax
import jax.numpy as jnp
from jax.experimental import pallas as pl
from jax.experimental.pallas import tpu as pltpu

# Fused head layout: scale occupies sublanes [0:3), shift sublanes [8:11), so
# both static slices of the (16, R) head start at an 8-aligned sublane offset.
_HEAD_ROWS = 16
_SCALE_ROW = 0
_SHIFT_ROW = 8


def _bf16_eup_available() -> bool:
    """bf16 transcendentals only pay off on v6e/v7x (v5e EUP has no bf16 path)."""
    try:
        kind = jax.devices()[0].device_kind.lower()
        return ('v6' in kind) or ('v7' in kind)
    except Exception:
        return False


def _pick_batch_tile(B: int, V: int, max_rows: int = 2048) -> int:
    """Pick the batch tile TB such that
         * TB divides B,
         * R = TB*V is a multiple of 128 (lane-dense blocks) or TB == B,
         * the grid B//TB has >= 2 steps whenever possible (two v7x TCs),
         * R <= max_rows (amortizes per-step overhead without VMEM pressure)."""
    candidates = [tb for tb in range(1, B + 1)
                  if B % tb == 0 and ((tb * V) % 128 == 0 or tb == B)]
    multi = [tb for tb in candidates if B // tb >= 2]
    pool = multi if multi else candidates
    within = [tb for tb in pool if tb * V <= max_rows]
    return max(within) if within else min(pool)


def _make_coupling_kernel(reverse: bool, tanh_bf16: bool):
    """Kernel body.  All per-atom data is channel-major: sublanes = channels,
       lanes = R = TB*V flattened (batch, atom) rows -> lane-dense everything."""

    def kernel(nm_ref, cond_ref, z_ref, w1t_ref, b1_ref, w2t_ref, b2_ref,
               z_out_ref, ls_out_ref):
        # --- conditioner MLP, bf16 operands / f32 accumulation, standard MXU ---
        # (H, K) @ (K, R) -> (H, R) f32
        h_pre = jnp.dot(w1t_ref[...], cond_ref[...],
                        preferred_element_type=jnp.float32) + b1_ref[...]
        if tanh_bf16:                         # v6e/v7x: bf16 EUP (2 elem/lane)
            h = jnp.tanh(h_pre.astype(jnp.bfloat16))
        else:                                 # v5e: transcendentals stay f32
            h = jnp.tanh(h_pre).astype(jnp.bfloat16)

        # Fused scale|shift head: (16, H) @ (H, R) -> (16, R) f32.
        head = jnp.dot(w2t_ref[...], h,
                       preferred_element_type=jnp.float32) + b2_ref[...]
        raw_scale = head[_SCALE_ROW:_SCALE_ROW + 3, :]       # (3, R)
        shift = head[_SHIFT_ROW:_SHIFT_ROW + 3, :]           # (3, R)
        scale = jax.nn.sigmoid(raw_scale) + 0.5              # strictly positive

        # Per-atom masked log|det J| contribution (summed over channels).
        ls = jnp.sum(jnp.log(scale), axis=0, keepdims=True) * nm_ref[...]  # (1, R)

        # --- affine coupling transform (lane-dense) ---
        z = z_ref[...]                                        # (3, R) f32
        if reverse:
            z_new = (z - shift) * pl.reciprocal(scale, approx=False)
            ls = -ls
        else:
            z_new = z * scale + shift

        z_out_ref[...] = z_new                                # (3, R) full-lane store
        ls_out_ref[...] = ls                                  # (1, R) full-lane store

    return kernel


def nvp_coupling_forward(params, x_features, x_coords, x_velocs,
                         z_coords, z_velocs, masked_elements,
                         delta_logp=None, reverse=False,
                         transformed_vars='positions',
                         batch_tile=None, tanh_bf16=None):
    """JAX wrapper mirroring NVPCouplingLayer.forward (forward or reverse)."""
    B, V, F = x_features.shape
    K = F + 6
    H = params['w1'].shape[1]
    N = B * V

    if tanh_bf16 is None:
        tanh_bf16 = _bf16_eup_available()
    TB = batch_tile if batch_tile is not None else _pick_batch_tile(B, V)
    if B % TB != 0 or ((TB * V) % 128 != 0 and TB != B):
        TB = _pick_batch_tile(B, V)
    R = TB * V
    grid = (B // TB,)

    # --- channel-major ("lane-dense") data prep: one fused XLA pass doing the
    #     concat + bf16 cast + transpose of the conditioner inputs.
    cond = jnp.concatenate([x_features, x_coords, x_velocs], axis=-1)    # (B,V,K)
    cond_t = cond.reshape(N, K).T.astype(jnp.bfloat16)                   # (K, N)
    z_in = z_coords if transformed_vars == 'positions' else z_velocs
    z_t = z_in.astype(jnp.float32).reshape(N, 3).T                       # (3, N)
    nm = jnp.logical_not(masked_elements).astype(jnp.float32).reshape(1, N)

    # --- weights: single fused first layer; head padded to 16 aligned rows ---
    w1t = params['w1'].T.astype(jnp.bfloat16)                            # (H, K)
    b1 = params['b1'].astype(jnp.float32).reshape(H, 1)
    w2p = (jnp.zeros((H, _HEAD_ROWS), jnp.float32)
           .at[:, _SCALE_ROW:_SCALE_ROW + 3].set(params['w2_scale'])
           .at[:, _SHIFT_ROW:_SHIFT_ROW + 3].set(params['w2_shift']))
    w2t = w2p.T.astype(jnp.bfloat16)                                     # (16, H)
    b2 = (jnp.zeros((_HEAD_ROWS, 1), jnp.float32)
          .at[_SCALE_ROW:_SCALE_ROW + 3, 0].set(params['b2_scale'].reshape(3))
          .at[_SHIFT_ROW:_SHIFT_ROW + 3, 0].set(params['b2_shift'].reshape(3)))

    kernel = _make_coupling_kernel(reverse, tanh_bf16)

    grid_spec = pltpu.PrefetchScalarGridSpec(
        num_scalar_prefetch=0,
        grid=grid,
        in_specs=[
            pl.BlockSpec((1, R), lambda b: (0, b)),            # not-masked   (1, N)
            pl.BlockSpec((K, R), lambda b: (0, b)),            # conditioner  (K, N) bf16
            pl.BlockSpec((3, R), lambda b: (0, b)),            # z            (3, N)
            pl.BlockSpec((H, K), lambda b: (0, 0)),            # w1^T
            pl.BlockSpec((H, 1), lambda b: (0, 0)),            # b1
            pl.BlockSpec((_HEAD_ROWS, H), lambda b: (0, 0)),   # w2^T fused head
            pl.BlockSpec((_HEAD_ROWS, 1), lambda b: (0, 0)),   # b2 fused head
        ],
        out_specs=[
            pl.BlockSpec((3, R), lambda b: (0, b)),            # z_out        (3, N)
            pl.BlockSpec((1, R), lambda b: (0, b)),            # masked log-scale
        ],
    )

    z_out_t, ls_out = pl.pallas_call(
        kernel,
        grid_spec=grid_spec,
        out_shape=(
            jax.ShapeDtypeStruct((3, N), jnp.float32),
            jax.ShapeDtypeStruct((1, N), jnp.float32),
        ),
        compiler_params=pltpu.CompilerParams(
            dimension_semantics=("parallel",),
            # Block footprint is ~1-2 MiB; 32 MiB leaves ample headroom on
            # v7x (64 MiB physical) and lifts v5e's 16 MiB scoped default.
            vmem_limit_bytes=32 * 1024 * 1024,
        ),
    )(nm, cond_t, z_t, w1t, b1, w2t, b2)

    # Tiny wrapper-side finishes: un-transpose z and reduce per-batch ldj.
    z_new = z_out_t.T.reshape(B, V, 3)
    logdetjac = jnp.sum(ls_out.reshape(B, V), axis=-1)        # [B]; sign set in-kernel

    if transformed_vars == 'positions':
        z_coords_out, z_velocs_out = z_new, z_velocs
    else:
        z_coords_out, z_velocs_out = z_coords, z_new

    new_delta_logp = (delta_logp - logdetjac) if delta_logp is not None else None
    return z_coords_out, z_velocs_out, new_delta_logp, logdetjac


def _reference(params, x_features, x_coords, x_velocs, z_in, masked_elements,
               reverse=False, tanh_bf16=False):
    """Pure-JAX reference of the same math (bf16 matmul operands, f32 accum)."""
    cond = jnp.concatenate([x_features, x_coords, x_velocs],
                           axis=-1).astype(jnp.bfloat16)
    w1 = params['w1'].astype(jnp.bfloat16)
    h_pre = jnp.einsum('bvk,kh->bvh', cond, w1,
                       preferred_element_type=jnp.float32) + params['b1']
    if tanh_bf16:
        h = jnp.tanh(h_pre.astype(jnp.bfloat16))
    else:
        h = jnp.tanh(h_pre).astype(jnp.bfloat16)
    raw_scale = jnp.einsum('bvh,hc->bvc', h, params['w2_scale'].astype(jnp.bfloat16),
                           preferred_element_type=jnp.float32) + params['b2_scale']
    shift = jnp.einsum('bvh,hc->bvc', h, params['w2_shift'].astype(jnp.bfloat16),
                       preferred_element_type=jnp.float32) + params['b2_shift']
    scale = jax.nn.sigmoid(raw_scale) + 0.5
    not_masked = (~masked_elements).astype(jnp.float32)[..., None]
    ldj = jnp.sum(jnp.log(scale) * not_masked, axis=(-1, -2))
    if reverse:
        return (z_in - shift) / scale, -ldj
    return z_in * scale + shift, ldj


if __name__ == "__main__":
    key = jax.random.PRNGKey(0)
    B, V, F, H = 16, 16, 32, 64          # small demo; TB=8 -> R=128, grid=2
    K = F + 6

    ks = jax.random.split(key, 12)
    params = {
        'w1': 0.1 * jax.random.normal(ks[0], (K, H), jnp.float32),
        'b1': 0.1 * jax.random.normal(ks[1], (1, H), jnp.float32),
        'w2_scale': 0.1 * jax.random.normal(ks[2], (H, 3), jnp.float32),
        'b2_scale': 0.1 * jax.random.normal(ks[3], (1, 3), jnp.float32),
        'w2_shift': 0.1 * jax.random.normal(ks[4], (H, 3), jnp.float32),
        'b2_shift': 0.1 * jax.random.normal(ks[5], (1, 3), jnp.float32),
    }

    x_features = jax.random.normal(ks[6], (B, V, F), jnp.float32)
    x_coords = jax.random.normal(ks[7], (B, V, 3), jnp.float32)
    x_velocs = jax.random.normal(ks[8], (B, V, 3), jnp.float32)
    z_coords = jax.random.normal(ks[9], (B, V, 3), jnp.float32)
    z_velocs = jax.random.normal(ks[10], (B, V, 3), jnp.float32)
    # a few trailing atoms of two batch elements are padding (masked)
    masked_elements = (jnp.zeros((B, V), jnp.bool_)
                       .at[1, V - 3:].set(True)
                       .at[10, V - 5:].set(True))
    delta_logp = jnp.zeros((B,), jnp.float32)

    tanh_bf16 = _bf16_eup_available()

    zc, zv, dlp, ldj = nvp_coupling_forward(
        params, x_features, x_coords, x_velocs, z_coords, z_velocs,
        masked_elements, delta_logp=delta_logp, reverse=False,
        transformed_vars='positions', tanh_bf16=tanh_bf16)
    jax.block_until_ready((zc, zv, dlp, ldj))

    # correctness check against pure-JAX reference (same bf16 matmul path;
    # loose tolerances cover XLA-vs-Mosaic accumulation-order differences)
    zc_ref, ldj_ref = _reference(params, x_features, x_coords, x_velocs,
                                 z_coords, masked_elements, reverse=False,
                                 tanh_bf16=tanh_bf16)
    assert jnp.allclose(zc, zc_ref, atol=2e-2), "z_coords mismatch"
    assert jnp.allclose(ldj, ldj_ref, atol=5e-2), "logdetjac mismatch"
    assert jnp.allclose(dlp, -ldj_ref, atol=5e-2), "delta_logp mismatch"
    assert jnp.allclose(zv, z_velocs), "z_velocs should pass through unchanged"

    # reverse (sampling) mode: round-trip must recover the input tightly since
    # scale/shift are recomputed identically by the same kernel
    zc_back, _, _, ldj_rev = nvp_coupling_forward(
        params, x_features, x_coords, x_velocs, zc, z_velocs,
        masked_elements, delta_logp=None, reverse=True,
        transformed_vars='positions', tanh_bf16=tanh_bf16)
    jax.block_until_ready(zc_back)
    assert jnp.allclose(zc_back, z_coords, atol=1e-4), "round-trip mismatch"
    assert jnp.allclose(ldj_rev, -ldj, atol=1e-5), "reverse ldj sign mismatch"

    print("KERNEL_OK")
</pallas_src>

<mosaic_0001>
module attributes {stable_mosaic.version = 11 : i64} {
  func.func @kernel(%arg0: i32, %arg1: memref<1x128xf32, #tpu.memory_space<vmem>>, %arg2: memref<38x128xbf16, #tpu.memory_space<vmem>>, %arg3: memref<3x128xf32, #tpu.memory_space<vmem>>, %arg4: memref<64x38xbf16, #tpu.memory_space<vmem>>, %arg5: memref<64x1xf32, #tpu.memory_space<vmem>>, %arg6: memref<16x64xbf16, #tpu.memory_space<vmem>>, %arg7: memref<16x1xf32, #tpu.memory_space<vmem>>, %arg8: memref<3x128xf32, #tpu.memory_space<vmem>>, %arg9: memref<1x128xf32, #tpu.memory_space<vmem>>) attributes {dimension_semantics = [#tpu.dimension_semantics<parallel>], iteration_bounds = array<i64: 2>, scalar_prefetch = 0 : i64, scratch_operands = 0 : i64, tpu.core_type = #tpu.core_type<tc>, window_params = [{transform_indices = @transform_0, window_bounds = array<i64: 1, 128>}, {transform_indices = @transform_1, window_bounds = array<i64: 38, 128>}, {transform_indices = @transform_2, window_bounds = array<i64: 3, 128>}, {pipeline_mode = #tpu.pipeline_mode<synchronous>, transform_indices = @transform_3, window_bounds = array<i64: 64, 38>}, {pipeline_mode = #tpu.pipeline_mode<synchronous>, transform_indices = @transform_4, window_bounds = array<i64: 64, 1>}, {pipeline_mode = #tpu.pipeline_mode<synchronous>, transform_indices = @transform_5, window_bounds = array<i64: 16, 64>}, {pipeline_mode = #tpu.pipeline_mode<synchronous>, transform_indices = @transform_6, window_bounds = array<i64: 16, 1>}, {transform_indices = @transform_7, window_bounds = array<i64: 3, 128>}, {transform_indices = @transform_8, window_bounds = array<i64: 1, 128>}]} {
    %c0 = arith.constant 0 : index
    %c0_0 = arith.constant 0 : index
    %0 = vector.load %arg4[%c0, %c0_0] : memref<64x38xbf16, #tpu.memory_space<vmem>>, vector<64x38xbf16>
    %c0_1 = arith.constant 0 : index
    %c0_2 = arith.constant 0 : index
    %1 = vector.load %arg2[%c0_1, %c0_2] : memref<38x128xbf16, #tpu.memory_space<vmem>>, vector<38x128xbf16>
    %cst = arith.constant dense<0.000000e+00> : vector<64x128xf32>
    %2 = tpu.matmul %0, %1, %cst {dimension_numbers = #tpu.dot_dimension_numbers<[1], [0], [0], [1], [0, 0, 1, 1], [], []>} : vector<64x38xbf16>, vector<38x128xbf16>, vector<64x128xf32> -> vector<64x128xf32>
    %c0_3 = arith.constant 0 : index
    %c0_4 = arith.constant 0 : index
    %3 = vector.load %arg5[%c0_3, %c0_4] : memref<64x1xf32, #tpu.memory_space<vmem>>, vector<64x1xf32>
    %4 = vector.broadcast %3 : vector<64x1xf32> to vector<64x128xf32>
    %5 = arith.addf %2, %4 : vector<64x128xf32>
    %6 = math.tanh %5 : vector<64x128xf32>
    %7 = arith.truncf %6 : vector<64x128xf32> to vector<64x128xbf16>
    %c0_5 = arith.constant 0 : index
    %c0_6 = arith.constant 0 : index
    %8 = vector.load %arg6[%c0_5, %c0_6] : memref<16x64xbf16, #tpu.memory_space<vmem>>, vector<16x64xbf16>
    %cst_7 = arith.constant dense<0.000000e+00> : vector<16x128xf32>
    %9 = tpu.matmul %8, %7, %cst_7 {dimension_numbers = #tpu.dot_dimension_numbers<[1], [0], [0], [1], [0, 0, 1, 1], [], []>} : vector<16x64xbf16>, vector<64x128xbf16>, vector<16x128xf32> -> vector<16x128xf32>
    %c0_8 = arith.constant 0 : index
    %c0_9 = arith.constant 0 : index
    %10 = vector.load %arg7[%c0_8, %c0_9] : memref<16x1xf32, #tpu.memory_space<vmem>>, vector<16x1xf32>
    %11 = vector.broadcast %10 : vector<16x1xf32> to vector<16x128xf32>
    %12 = arith.addf %9, %11 : vector<16x128xf32>
    %13 = vector.extract_strided_slice %12 {offsets = [0, 0], sizes = [3, 128], strides = [1, 1]} : vector<16x128xf32> to vector<3x128xf32>
    %14 = vector.extract_strided_slice %12 {offsets = [8, 0], sizes = [3, 128], strides = [1, 1]} : vector<16x128xf32> to vector<3x128xf32>
    %15 = arith.negf %13 : vector<3x128xf32>
    %16 = math.exp %15 : vector<3x128xf32>
    %cst_10 = arith.constant 1.000000e+00 : f32
    %17 = vector.broadcast %cst_10 : f32 to vector<3x128xf32>
    %18 = arith.addf %17, %16 : vector<3x128xf32>
    %19 = arith.divf %17, %18 : vector<3x128xf32>
    %cst_11 = arith.constant 5.000000e-01 : f32
    %20 = vector.broadcast %cst_11 : f32 to vector<3x128xf32>
    %21 = arith.addf %19, %20 : vector<3x128xf32>
    %22 = math.log %21 : vector<3x128xf32>
    %cst_12 = arith.constant dense<0.000000e+00> : vector<128xf32>
    %23 = vector.multi_reduction <add>, %22, %cst_12 [0] : vector<3x128xf32> to vector<128xf32>
    %24 = vector.shape_cast %23 : vector<128xf32> to vector<1x128xf32>
    %c0_13 = arith.constant 0 : index
    %c0_14 = arith.constant 0 : index
    %25 = vector.load %arg1[%c0_13, %c0_14] : memref<1x128xf32, #tpu.memory_space<vmem>>, vector<1x128xf32>
    %26 = arith.mulf %24, %25 : vector<1x128xf32>
    %c0_15 = arith.constant 0 : index
    %c0_16 = arith.constant 0 : index
    %27 = vector.load %arg3[%c0_15, %c0_16] : memref<3x128xf32, #tpu.memory_space<vmem>>, vector<3x128xf32>
    %28 = arith.mulf %27, %21 : vector<3x128xf32>
    %29 = arith.addf %28, %14 : vector<3x128xf32>
    %c0_17 = arith.constant 0 : index
    %c0_18 = arith.constant 0 : index
    %30 = vector.load %arg8[%c0_17, %c0_18] : memref<3x128xf32, #tpu.memory_space<vmem>>, vector<3x128xf32>
    tpu.vector_store %arg8[%c0_17, %c0_18], %29 {strides = array<i32>} : memref<3x128xf32, #tpu.memory_space<vmem>>, vector<3x128xf32>,
    %c0_19 = arith.constant 0 : index
    %c0_20 = arith.constant 0 : index
    %31 = vector.load %arg9[%c0_19, %c0_20] : memref<1x128xf32, #tpu.memory_space<vmem>>, vector<1x128xf32>
    tpu.vector_store %arg9[%c0_19, %c0_20], %26 {strides = array<i32>} : memref<1x128xf32, #tpu.memory_space<vmem>>, vector<1x128xf32>,
    return
  }
  func.func @transform_0(%arg0: i32) -> (i32, i32) {
    %c0_i32 = arith.constant 0 : i32
    %c0_i32_0 = arith.constant 0 : i32
    return %c0_i32, %arg0 : i32, i32
  }
  func.func @transform_1(%arg0: i32) -> (i32, i32) {
    %c0_i32 = arith.constant 0 : i32
    %c0_i32_0 = arith.constant 0 : i32
    return %c0_i32, %arg0 : i32, i32
  }
  func.func @transform_2(%arg0: i32) -> (i32, i32) {
    %c0_i32 = arith.constant 0 : i32
    %c0_i32_0 = arith.constant 0 : i32
    return %c0_i32, %arg0 : i32, i32
  }
  func.func @transform_3(%arg0: i32) -> (i32, i32) {
    %c0_i32 = arith.constant 0 : i32
    %c0_i32_0 = arith.constant 0 : i32
    %c0_i32_1 = arith.constant 0 : i32
    return %c0_i32, %c0_i32_0 : i32, i32
  }
  func.func @transform_4(%arg0: i32) -> (i32, i32) {
    %c0_i32 = arith.constant 0 : i32
    %c0_i32_0 = arith.constant 0 : i32
    %c0_i32_1 = arith.constant 0 : i32
    return %c0_i32, %c0_i32_0 : i32, i32
  }
  func.func @transform_5(%arg0: i32) -> (i32, i32) {
    %c0_i32 = arith.constant 0 : i32
    %c0_i32_0 = arith.constant 0 : i32
    %c0_i32_1 = arith.constant 0 : i32
    return %c0_i32, %c0_i32_0 : i32, i32
  }
  func.func @transform_6(%arg0: i32) -> (i32, i32) {
    %c0_i32 = arith.constant 0 : i32
    %c0_i32_0 = arith.constant 0 : i32
    %c0_i32_1 = arith.constant 0 : i32
    return %c0_i32, %c0_i32_0 : i32, i32
  }
  func.func @transform_7(%arg0: i32) -> (i32, i32) {
    %c0_i32 = arith.constant 0 : i32
    %c0_i32_0 = arith.constant 0 : i32
    return %c0_i32, %arg0 : i32, i32
  }
  func.func @transform_8(%arg0: i32) -> (i32, i32) {
    %c0_i32 = arith.constant 0 : i32
    %c0_i32_0 = arith.constant 0 : i32
    return %c0_i32, %arg0 : i32, i32
  }
}

</mosaic_0001>

<bundles_post_ra>
// kernel: tpu_custom_call.1
= control target key start
LH: loop header
LB: loop body
LE: loop exit
PB: predicated region body
PF: predicated region fallthrough
CT: control target
= control target key end

     0   :  { %14 = vsyncpa [#allocation4], 0  ;;  %s1322_s0 = inlined_call_operand.vmem [shape: f32[1,256], index: 0, kind: input, shape index: {}]   ;;  %s1323_s1 = inlined_call_operand.vmem [shape: bf16[38,256], index: 1, kind: input, shape index: {}]   ;;  %s1324_s2 = inlined_call_operand.vmem [shape: f32[3,256], index: 2, kind: input, shape index: {}]   ;;  %s1325_s3 = inlined_call_operand.vmem [shape: bf16[64,38], index: 3, kind: input, shape index: {}]   ;;  %s1326_s4 = inlined_call_operand.vmem [shape: f32[64,1], index: 4, kind: input, shape index: {}]   ;;  %s1327_s5 = inlined_call_operand.vmem [shape: bf16[16,64], index: 5, kind: input, shape index: {}]   ;;  %s1328_s6 = inlined_call_operand.vmem [shape: f32[16,1], index: 6, kind: input, shape index: {}]   ;;  %s1329_s7 = inlined_call_operand.hbm [shape: f32[3,256], index: 7, kind: output, shape index: {0}]   ;;  %s1330_s8 = inlined_call_operand.hbm [shape: f32[1,256], index: 8, kind: output, shape index: {1}]  }
   0x1   :  { %16 = vsyncpa [#allocation4 + $0x1], 0 }
   0x2   :  { %17 = vsyncpa [#allocation6], 0 }
   0x3   :  { %19 = vsyncpa [#allocation6 + $0x1], 0  ;;  %s1117_s27 = smov 0   ;;  %s1119_s28 = smov 0  }
   0x4   :  { %s1121_s29 = smov 0   ;;  %s1123_s30 = smov 0  }
   0x5 LB: > { %s1138_s9 = sadd.s32 4294967295, %s1065_s30   ;;  %s825_s10 = sadd.s32 4294967294, %s1065_s30   ;;  %s1065_s30 = sphi %s1123_s30, %s1336_s30   ;;  %s1061_s29 = sphi %s1121_s29, %s1335_s29   ;;  %s1057_s28 = sphi %s1119_s28, %s1334_s28   ;;  %s1053_s27 = sphi %s1117_s27, %s1333_s27  }
   0x6   : > { %s1142_s11 = sadd.s32 1, %s1065_s30   ;;  %s58_s12 = sadd.s32 1, %s1061_s29 }
   0x7   : > { %s55_s13 = ssub.s32 %s1065_s30, %s1142_s11  ;;  %p65_p0 = scmp.ne.s32.totalorder %s1061_s29, %s1057_s28 }
   0x8   : > { %p56_p1 = scmp.eq.s32.totalorder %s55_s13, 0  ;;  %p66_p2 = scmp.eq.s32.totalorder %s1065_s30, 0 }
   0x9   : > { %p205_p3 = scmp.eq.s32.totalorder %s1138_s9, 1  ;;  %p210_p4 = scmp.ne.s32.totalorder %s1057_s28, %s1053_s27 }
   0xa   : > { %s1154_s14 = scalar_select %p56_p1, %s1061_s29, %s58_s12  }
   0xb   : > { %p67_p5 = por %p66_p2, %p65_p0  ;;  %p1156_p6 = por %p205_p3, %p65_p0 }
   0xc   : > { %p211_p7 = scmp.eq.s32.totalorder %s825_s10, 1  ;;  %p827_p9 = scmp.ge.s32.totalorder %s1065_s30, 2 }
   0xe   : > { %p1160_p8 = por %p211_p7, %p210_p4  ;;  %265 = sbr.rel (%p827_p9) target bundleno = 29 (0x1d), region = 32 }
  0x15   : > { %274 = sbr.rel (!%p67_p5) target bundleno = 29 (0x1d), region = 40  ;;  %s276_s17 = sand.u32 (%p67_p5), 1, %s1061_s29  }
  0x16   : > { %s828_s18 = sshll.u32 (%p67_p5), %s1065_s30, 2  ;;  %s890_s19 = smul.u32 (%p67_p5), 20, %s276_s17 }
  0x17   : > { %s280_s22 = scalar_lea.vmem (%p67_p5), %s1323_s1, %s828_s18 }
  0x18   : > { %v296_v0 = vld [vmem:[%s280_s22] sm:$0xf] (%p67_p5)  ;;  %v298_v1 = vld [vmem:[%s280_s22 + $0x8] sm:$0xf] (%p67_p5)  ;;  %v300_v2 = vld [vmem:[%s280_s22 + $0x10] sm:$0xf] (%p67_p5) }
  0x19   : > { %v302_v3 = vld [vmem:[%s280_s22 + $0x18] sm:$0xf] (%p67_p5)  ;;  %v304_v4 = vld [vmem:[%s280_s22 + $0x20] sm:$0xf] (%p67_p5)  ;;  %s278_s23 = scalar_lea.vmem (%p67_p5), [#allocation2], %s890_s19 }
  0x1a   : > { %297 = vst [vmem:[%s278_s23] sm:$0xf] (%p67_p5), %v296_v0  ;;  %299 = vst [vmem:[%s278_s23 + $0x4] sm:$0xf] (%p67_p5), %v298_v1 }
  0x1b   : > { %301 = vst [vmem:[%s278_s23 + $0x8] sm:$0xf] (%p67_p5), %v300_v2  ;;  %303 = vst [vmem:[%s278_s23 + $0xc] sm:$0xf] (%p67_p5), %v302_v3 }
  0x1c   : > { %305 = vst [vmem:[%s278_s23 + $0x10] sm:$0xf] %v304_v4 }
  0x1d PF: > { %p829_p10 = scmp.ge.s32.totalorder %s1065_s30, 1  ;;  %p344_p11 = scmp.lt.s32.totalorder %s1065_s30, 3 }
  0x1f   : > { %p345_p12 = pnand %p829_p10, %p344_p11 }
  0x20   : > { %s1175_s24 = sand.u32 (!%p345_p12), 1, %s1057_s28   ;;  %v944_v5 = vld [vmem:[%s1325_s3] sm:$0xff] (!%p345_p12)   ;;  %vm499_vm0 = vcmask (!%p345_p12), 310272   ;;  %v1067_v8 = vmov (!%p345_p12), 0   ;;  %v418_v10 = vld [vmem:[%s1326_s4 + $0x10] sm:$0xff] (!%p345_p12)  ;;  %vm512_vm1 = vcmask (!%p345_p12), 1042432  }
  0x21   : > { %348 = sbr.rel (%p345_p12) target bundleno = 586 (0x24a), region = 85  ;;  %869 = vmatprep.mubr.msk.bf16.mxu0 (!%p345_p12), %vm499_vm0, %v944_v5  ;;  %939 = vset.pattern.permute.xlu0 (!%p345_p12), %v1067_v8  ;;  %v416_v9 = vld [vmem:[%s1326_s4] sm:$0xff] (!%p345_p12)  ;;  %v417_v12 = vld [vmem:[%s1326_s4 + $0x8] sm:$0xff] (!%p345_p12)  ;;  %v419_v13 = vld [vmem:[%s1326_s4 + $0x18] sm:$0xff] (!%p345_p12)  ;;  %v1068_v24 = vmov (!%p345_p12), 0.0   ;;  %vm1069_vm2 = vmmov (!%p345_p12), 0  }
  0x22   : > { %s891_s25 = smul.u32 (!%p345_p12), 20, %s1175_s24  ;;  %940 = vset.pattern.permute.xlu1 (!%p345_p12), %v1067_v8  ;;  %426 = vperm.xlu0 (!%p345_p12), %939, %v416_v9   ;;  %v420_v15 = vld [vmem:[%s1326_s4 + $0x20] sm:$0xff] (!%p345_p12)  ;;  %v945_v16 = vld [vmem:[%s1325_s3 + $0x8] sm:$0xff] (!%p345_p12)   ;;  %v946_v18 = vld [vmem:[%s1325_s3 + $0x10] sm:$0xff] (!%p345_p12)   ;;  %vm612_vm3 = vcmask (!%p345_p12), 523264   ;;  %p395_p13 = scmp.lt.s32.totalorder (!%p345_p12), %s1138_s9, 1 }
  0x23   : > { %436 = vperm.xlu1 (!%p345_p12), %940, %v418_v10   ;;  %v421_v17 = vld [vmem:[%s1326_s4 + $0x28] sm:$0xff] (!%p345_p12)  ;;  %v422_v19 = vld [vmem:[%s1326_s4 + $0x30] sm:$0xff] (!%p345_p12)  ;;  %v423_v20 = vld [vmem:[%s1326_s4 + $0x38] sm:$0xff] (!%p345_p12)  ;;  %877 = vmatprep.subr.bf16.mxu1 (!%p345_p12), %v1068_v24  ;;  %s830_s26 = sshll.u32 (!%p345_p12), %s1175_s24, 2  ;;  %s847_s10 = sshll.u32 (!%p345_p12), %s1138_s9, 6 }
  0x24   : > { %s353_s12 = scalar_lea.vmem (!%p345_p12), [#allocation2], %s891_s25  ;;  %v595_v21 = vld [vmem:[%s1328_s6] sm:$0xff] (!%p345_p12)  ;;  %v947_v22 = vld [vmem:[%s1325_s3 + $0x18] sm:$0xff] (!%p345_p12)   ;;  %v596_v23 = vld [vmem:[%s1328_s6 + $0x8] sm:$0xff] (!%p345_p12)  ;;  %885 = vmatprep.mubr.msk.bf16.mxu1 (!%p345_p12), %vm1069_vm2, %v1068_v24  ;;  %s1242_s19 = scalar_lea.hbm (!%p345_p12), %s1329_s7, %s847_s10 }
  0x25   : > { %v941_v6 = vld [vmem:[%s353_s12] sm:$0xff] (!%p345_p12)   ;;  %v942_v7 = vld [vmem:[%s353_s12 + $0x8] sm:$0xff] (!%p345_p12)   ;;  %v943_v11 = vld [vmem:[%s353_s12 + $0x10] ss:$0 sps:$4 sm:$0x77] (!%p345_p12)   ;;  %s388_s12 = scalar_lea.vmem (!%p345_p12), [#allocation3], %s830_s26 }
  0x26   : > { %863 = vmatprep.subr.bf16.mxu0 (!%p345_p12), %v941_v6  ;;  %v514_v14 = vsel (!%p345_p12), %vm512_vm1, %v943_v11, 0  ;;  %431 = vperm.xlu0 (!%p345_p12), %939, %v417_v12   ;;  %v948_v61 = vld [vmem:[%s1327_s5] sm:$0xff] (!%p345_p12)   ;;  %s698_s13 = sshll.u32 (!%p345_p12), %s388_s12, 4  ;;  %s1070_s23 = smov (!%p345_p12), [#allocation3]   ;;  %s1244_s13 = int_to_ptr.vmem [resolvable:$true] %s698_s13 }
  0x27   : > { %864 = vmatpush3.bf16.msra.mxu0 (!%p345_p12), %v941_v6  ;;  %441 = vperm.xlu1 (!%p345_p12), %940, %v419_v13   ;;  %s971_s22 = scalar_lea.vmem (!%p345_p12), %s1244_s13, 64 }
  0x28   : > { %865 = vmatprep.subr.bf16.mxu0 %v942_v7  ;;  %s1231_s20 = scalar_select %p395_p13, %s1138_s9, 1 }
  0x29   : > { %p972_p0 = scmp.ne.s32.totalorder %s1244_s13, %s971_s22 }
  0x2a   : > { %446 = vperm.xlu0 %939, %v420_v15   ;;  %s831_s21 = sshll.u32 %s1231_s20, 2 }
  0x2b   : > { %866 = vmatpush3.bf16.msra.mxu0 %v942_v7  ;;  %451 = vperm.xlu1 %940, %v421_v17   ;;  %s401_s25 = scalar_lea.vmem %s1324_s2, %s831_s21  ;;  %s681_s21 = scalar_lea.sflag [#allocation4], %s1175_s24 }
  0x2c   : > { %889 = vmatprep.subr.msk.bf16.mxu0 %vm512_vm1, %v943_v11  ;;  %v675_v8 = vld [vmem:[%s401_s25] sm:$0x7]  ;;  %p973_p1 = pnand %p972_p0, %p1156_p6  ;;  %s975_s25 = sshll.u32 %s1070_s23, 4  ;;  %s976_s25 = int_to_ptr.vmem [resolvable:$false] %s975_s25 }
  0x2d   : > { %s977_s26 = scalar_lea.vmem %s976_s25, 128  ;;  %p978_p3 = scmp.lt.s32.totalorder %s1244_s13, %s976_s25 }
  0x2e   : > { %456 = vperm.xlu0 %939, %v422_v19   ;;  %p974_p2 = pneg %p973_p1  ;;  %p979_p4 = scmp.lt.s32.totalorder %s977_s26, %s971_s22 }
  0x2f   : > { %868 = vmatpush3.bf16.msra.mxu0 %v514_v14  ;;  %461 = vperm.xlu1 %940, %v423_v20  }
  0x30   : > { %p980_p5 = por %p979_p4, %p978_p3 }
  0x32   : > { %870 = vmatmul.mubr.msk.bf16.vlgmr.msra.gmra.mrb[0].mxu0 %vm499_vm0, %v945_v16  ;;  %599 = vperm.xlu0 %939, %v595_v21   ;;  %p981_p7 = pnand %p980_p5, %p974_p2 }
  0x33   : > { %873 = vmatprep.mubr.msk.bf16.mxu0 %vm499_vm0, %v946_v18  ;;  %604 = vperm.xlu1 %940, %v596_v23  }
  0x3a   : > { %874 = vmatmul.mubr.msk.bf16.gmra.mrb[4].mxu0 %vm499_vm0, %v947_v22 }
  0xa1   : > { %v427_v25 = vpop.permute.xlu0 %426 }
  0xa2   : > { %v437_v26 = vpop.permute.xlu1 %436 }
  0xa5   : > { %v432_v27 = vpop.permute.xlu0 %431 }
  0xa6   : > { %v442_v28 = vpop.permute.xlu1 %441 }
  0xa9   : > { %v447_v32 = vpop.permute.xlu0 %446 }
  0xaa   : > { %v452_v37 = vpop.permute.xlu1 %451 }
  0xad   : > { %v457_v39 = vpop.permute.xlu0 %456 }
  0xae   : > { %v462_v43 = vpop.permute.xlu1 %461 }
  0xb1   : > { %v600_v62 = vpop.permute.xlu0 %599 }
  0xb2   : > { %v605_v10 = vpop.permute.xlu1 %604 }
 0x105   : > { %v871_v29 = vpop.f32.mrb[0].mxu0 }
 0x106   : > { %v559_v30 = vadd.f32 %v871_v29, %v437_v26  ;;  %v550_v31 = vpop.f32.mrb[1].mxu0 }
 0x107   : > { %v551_v33 = vadd.f32 %v550_v31, %v427_v25  ;;  %v872_v34 = vpop.f32.mrb[2].mxu0 }
 0x108   : > { %949 = vtanh.f32 %v559_v30  ;;  %v562_v35 = vadd.f32 %v872_v34, %v442_v28  ;;  %v553_v36 = vpop.f32.mrb[3].mxu0 }
 0x109   : > { %951 = vtanh.f32 %v551_v33  ;;  %v554_v38 = vadd.f32 %v553_v36, %v432_v27 }
 0x10a   : > { %953 = vtanh.f32 %v562_v35 }
 0x10b   : > { %955 = vtanh.f32 %v554_v38 }
 0x10d   : > { %v875_v40 = vpop.f32.mrb[4].mxu0 }
 0x10e   : > { %v575_v41 = vadd.f32 %v875_v40, %v457_v39  ;;  %v566_v42 = vpop.f32.mrb[5].mxu0 }
 0x10f   : > { %v567_v44 = vadd.f32 %v566_v42, %v447_v32  ;;  %v876_v45 = vpop.f32.mrb[6].mxu0 }
 0x110   : > { %957 = vtanh.f32 %v575_v41  ;;  %v578_v46 = vadd.f32 %v876_v45, %v462_v43  ;;  %v569_v47 = vpop.f32.mrb[7].mxu0 }
 0x111   : > { %959 = vtanh.f32 %v567_v44  ;;  %v570_v48 = vadd.f32 %v569_v47, %v452_v37 }
 0x112   : > { %v950_v49 = vpop.eup %949  ;;  %961 = vtanh.f32 %v578_v46 }
 0x113   : > { %v952_v50 = vpop.eup %951  ;;  %963 = vtanh.f32 %v570_v48 }
 0x114   : > { %v954_v51 = vpop.eup %953 }
 0x115   : > { %v956_v52 = vpop.eup %955  ;;  %v590_v53 = vpack.c.bf16 %v954_v51, %v950_v49 }
 0x116   : > { %v589_v54 = vpack.c.bf16 %v956_v52, %v952_v50 }
 0x118   : > { %878 = vmatpush3.bf16.msra.mxu1 %v589_v54 }
 0x119   : > { %879 = vmatprep.subr.bf16.mxu1 %v1068_v24 }
 0x11a   : > { %v958_v55 = vpop.eup %957 }
 0x11b   : > { %v960_v56 = vpop.eup %959 }
 0x11c   : > { %v962_v57 = vpop.eup %961  ;;  %880 = vmatpush3.bf16.msra.mxu1 %v590_v53 }
 0x11d   : > { %v964_v58 = vpop.eup %963  ;;  %881 = vmatprep.subr.bf16.mxu1 %v1068_v24  ;;  %v592_v59 = vpack.c.bf16 %v962_v57, %v958_v55 }
 0x11e   : > { %v591_v60 = vpack.c.bf16 %v964_v58, %v960_v56 }
 0x120   : > { %882 = vmatpush3.bf16.msra.mxu1 %v591_v60 }
 0x121   : > { %883 = vmatprep.subr.bf16.mxu1 %v1068_v24 }
 0x124   : > { %884 = vmatpush3.bf16.msra.mxu1 %v592_v59 }
 0x127   : > { %886 = vmatmul.mubr.msk.bf16.vlgmr.msra.gmra.mrb[0].mxu1 %vm612_vm3, %v948_v61 }
 0x1fa   : > { %v650_v63 = vpop.f32.mrb[0].mxu1 }
 0x1fb   : > { %v651_v0 = vadd.f32 %v650_v63, %v600_v62  ;;  %v887_v1 = vpop.f32.mrb[1].mxu1 }
 0x1fc   : > { %v653_v2 = vpop.f32.mrb[2].mxu1 }
 0x1fd   : > { %v845_v3 = vmul.f32 -1.442695, %v651_v0  ;;  %v888_v4 = vpop.f32.mrb[3].mxu1  ;;  %v654_v11 = vadd.f32 %v653_v2, %v605_v10 }
 0x1ff   : > { %965 = vpow2.f32 %v845_v3 }
 0x209   : > { %v966_v5 = vpop.eup %965 }
 0x20a   : > { %v660_v6 = vadd.f32 1.0, %v966_v5 }
 0x20c   : > { %967 = vrcp.f32 %v660_v6 }
 0x216   : > { %v968_v7 = vpop.eup %967 }
 0x217   : > { %v663_v9 = vadd.f32 0.5, %v968_v7 }
 0x219   : > { %969 = vlog2.f32 %v663_v9  ;;  %v676_v12 = vmul.f32 %v675_v8, %v663_v9 }
 0x21b   : > { %v677_v13 = vadd.f32 %v676_v12, %v654_v11 }
 0x21d   : > { %678 = vst [vmem:[%s388_s12] sm:$0x7] %v677_v13 }
 0x21e   : > { %984 = shalt.err (!%p981_p7)
}
 0x21f   : > { %s985_s10 = scalar_lea.hbm %s1242_s19, 64  ;;  %s989_s18 = scalar_lea.hbm %s1329_s7, 128 }
 0x220   : > { %p986_p10 = scmp.ne.s32.totalorder %s1242_s19, %s985_s10  ;;  %p990_p13 = scmp.lt.u32.totalorder %s1242_s19, %s1329_s7 }
 0x221   : > { %p991_p0 = scmp.lt.u32.totalorder %s989_s18, %s985_s10  ;;  %p993_p2 = scmp.lt.u32.totalorder %s985_s10, %s1242_s19 }
 0x222   : > { %p987_p11 = pnand %p986_p10, %p1156_p6 }
 0x223   : > { %p992_p1 = por %p991_p0, %p990_p13 }
 0x224   : > { %p988_p12 = pneg %p987_p11 }
 0x225   : > { %p994_p3 = por %p993_p2, %p992_p1 }
 0x227   : > { %p995_p4 = pnand %p994_p3, %p988_p12 }
 0x229   : > { %998 = shalt.err (!%p995_p4)
}
 0x22a   : > { %892 = dma.vmem_to_hbm [thread:$0]  (%p1156_p6), %s1244_s13, 64, %s1242_s19, %s681_s21   ;;  %v970_v14 = vpop.eup %969 }
 0x22b   : > { %v665_v15 = vmul.f32 0.6931472, %v970_v14  ;;  %s397_s10 = scalar_lea.vmem %s1322_s0, %s1231_s20  ;;  %s848_s12 = sshll.u32 %s1138_s9, 4 }
 0x22c   : > { %v673_v22 = vld [vmem:[%s397_s10] sm:$0x1]  ;;  %s394_s17 = scalar_lea.vmem [#allocation5], %s1175_s24  ;;  %s1278_s21 = scalar_lea.hbm %s1330_s8, %s848_s12 }
 0x22d   : > { %v666_v16 = vsel %vm512_vm1, %v665_v15, 0.0  ;;  %s711_s18 = sshll.u32 %s394_s17, 4  ;;  %s686_s20 = scalar_lea.sflag [#allocation6], %s1175_s24  ;;  %s1280_s18 = int_to_ptr.vmem [resolvable:$true] %s711_s18 }
 0x22e   : > { %v667_v17 = vrot.slane %v666_v16, 4  ;;  %s999_s23 = scalar_lea.vmem %s1280_s18, 16  ;;  %s1071_s9 = smov [#allocation5]  }
 0x22f   : > { %p1000_p5 = scmp.ne.s32.totalorder %s1280_s18, %s999_s23  ;;  %s1003_s25 = sshll.u32 %s1071_s9, 4  ;;  %s1004_s25 = int_to_ptr.vmem [resolvable:$false] %s1003_s25 }
 0x230   : > { %v668_v18 = vadd.f32 %v667_v17, %v666_v16  ;;  %s1005_s22 = scalar_lea.vmem %s1004_s25, 32  ;;  %p1006_p11 = scmp.lt.s32.totalorder %s1280_s18, %s1004_s25 }
 0x231   : > { %p1001_p7 = pnand %p1000_p5, %p1156_p6  ;;  %p1007_p12 = scmp.lt.s32.totalorder %s1005_s22, %s999_s23 }
 0x232   : > { %v669_v19 = vrot.slane %v668_v18, 2 }
 0x233   : > { %p1002_p10 = pneg %p1001_p7  ;;  %p1008_p13 = por %p1007_p12, %p1006_p11 }
 0x234   : > { %v670_v20 = vadd.f32 %v669_v19, %v668_v18 }
 0x235   : > { %p1009_p0 = pnand %p1008_p13, %p1002_p10 }
 0x236   : > { %v671_v21 = vrot.slane %v670_v20, 1 }
 0x238   : > { %v672_v23 = vadd.f32 %v671_v21, %v670_v20 }
 0x23a   : > { %v674_v24 = vmul.f32 %v673_v22, %v672_v23 }
 0x23c   : > { %679 = vst [vmem:[%s394_s17] sm:$0x1] %v674_v24 }
 0x23d   : > { %1012 = shalt.err (!%p1009_p0)
}
 0x23e   : > { %s1013_s24 = scalar_lea.hbm %s1278_s21, 16  ;;  %s1017_s12 = scalar_lea.hbm %s1330_s8, 32 }
 0x23f   : > { %p1014_p1 = scmp.ne.s32.totalorder %s1278_s21, %s1013_s24  ;;  %p1018_p4 = scmp.lt.u32.totalorder %s1278_s21, %s1330_s8 }
 0x240   : > { %p1019_p5 = scmp.lt.u32.totalorder %s1017_s12, %s1013_s24  ;;  %p1021_p10 = scmp.lt.u32.totalorder %s1013_s24, %s1278_s21 }
 0x241   : > { %p1015_p2 = pnand %p1014_p1, %p1156_p6 }
 0x242   : > { %p1020_p7 = por %p1019_p5, %p1018_p4 }
 0x243   : > { %p1016_p3 = pneg %p1015_p2 }
 0x244   : > { %p1022_p11 = por %p1021_p10, %p1020_p7 }
 0x246   : > { %p1023_p12 = pnand %p1022_p11, %p1016_p3 }
 0x248   : > { %1026 = shalt.err (!%p1023_p12)
}
 0x249   : > { %893 = dma.vmem_to_hbm [thread:$0]  (%p1156_p6), %s1280_s18, 16, %s1278_s21, %s686_s20  }
 0x24a PF: > { %s723_s19 = sand.u32 1, %s1053_s27   ;;  %p897_p13 = pnand %p827_p9, %p1160_p8 }
 0x24b   : > { %s724_s23 = scalar_lea.sflag [#allocation4], %s723_s19 }
 0x24c   : > { %1044 = dma.done.wait (!%p897_p13), %s724_s23, 64  }
 0x24d   : > { %1046 = vsyncadd (!%p897_p13), %s724_s23, 4294967232  ;;  %s733_s9 = scalar_lea.sflag [#allocation6], %s723_s19 }
 0x24e   : > { %1048 = dma.done.wait (!%p897_p13), %s733_s9, 16  }
 0x24f   : > { %1050 = vsyncadd (!%p897_p13), %s733_s9, 4294967280  ;;  %p22_p6 = scmp.ge.s32.totalorder %s1142_s11, 4   ;;  %s1333_s27 = smov %s1057_s28 }
 0x250   : > { %s1334_s28 = smov %s1061_s29  ;;  %s1335_s29 = smov %s1154_s14 }
 0x251   : > { %s1336_s30 = smov %s1142_s11  ;;  %24 = sbr.rel (!%p22_p6) target bundleno = 5 (0x5), region = 152 }
 0x258   :  { %737 = vsyncpa [#allocation4], 1 }
 0x259   :  { %739 = vsyncpa [#allocation4 + $0x1], 1 }
 0x25a   :  { %740 = vsyncpa [#allocation6], 1 }
 0x25b   :  { %742 = vsyncpa [#allocation6 + $0x1], 1 }

</bundles_post_ra>
